<compile_context>
chip_gen: v7x
topology: tpu7x:2x2x1
jax: 0.10.0
libtpu: 0.0.40
codegen_flags: <defaults>
</compile_context>

<pallas_src>
import math

import jax
import jax.numpy as jnp
from jax.experimental import pallas as pl
from jax.experimental.pallas import tpu as pltpu

# ---- config mirroring `args` ---------------------------------------------------
FACTOR_NUM_MF = 8            # args.factor_num (MF embeddings unused in forward)
LAYERS = (64, 32, 16, 8)     # args.layers
EMB_DIM = LAYERS[0] // 2     # = 32 (== LAYERS[1], required by affine_output)
IN_DIM = 2 * EMB_DIM         # = 64, feature rows of the packed input

# Packed weight-slab row offsets (slab shape (64, 64), torch (out, in) layout):
#   rows  0:32 -> W0 (32, 64)
#   rows 32:48 -> W1 (16, 32)  in cols 0:32
#   rows 48:56 -> W2 ( 8, 16)  in cols 0:16
#   row  56    -> Wa ( 1, 40)  cols 0:8 = MLP part, cols 8:40 = GMF part
_R0, _R1, _R2, _RA = 0, 32, 48, 56


# ---- Pallas kernel ---------------------------------------------------------------
def neucf_kernel(x_ref, w_ref, b_ref, out_ref):
    f32, bf16 = jnp.float32, jnp.bfloat16
    x = x_ref[...]           # (64, Bt) bf16 : rows 0:32 = user, rows 32:64 = item
    w = w_ref[...]           # (64, 64) f32 resident weight slab
    b = b_ref[...]           # (64, 1)  f32 resident bias slab

    # GMF branch: elementwise user*item. Stays bf16 -- it only feeds a bf16 dot.
    mf = x[0:EMB_DIM, :] * x[EMB_DIM:IN_DIM, :]                            # (32, Bt)

    # MLP tower, feature-major (features on sublanes, batch on lanes).
    # cat([u, it], -1) @ W0.T  ==  W0 @ [u; it]  -> one K=64 bf16 MXU pass.
    w0 = w[_R0:_R1, :].astype(bf16)                                        # (32, 64)
    h = jnp.dot(w0, x, preferred_element_type=f32) + b[_R0:_R1, :]
    h = jnp.maximum(h, 0.0).astype(bf16)                                   # (32, Bt)

    w1 = w[_R1:_R2, 0:LAYERS[1]].astype(bf16)                              # (16, 32)
    h = jnp.dot(w1, h, preferred_element_type=f32) + b[_R1:_R2, :]
    h = jnp.maximum(h, 0.0).astype(bf16)                                   # (16, Bt)

    w2 = w[_R2:_RA, 0:LAYERS[2]].astype(bf16)                              # ( 8, 16)
    h = jnp.dot(w2, h, preferred_element_type=f32) + b[_R2:_RA, :]
    h = jnp.maximum(h, 0.0).astype(bf16)                                   # ( 8, Bt)

    # affine_output on cat([mlp, mf], -1) -> lane-dense (1, Bt) logits.
    wa_mlp = w[_RA:_RA + 1, 0:LAYERS[3]].astype(bf16)                      # (1, 8)
    wa_mf = w[_RA:_RA + 1, LAYERS[3]:LAYERS[3] + EMB_DIM].astype(bf16)     # (1, 32)
    logits = (jnp.dot(wa_mlp, h, preferred_element_type=f32)
              + jnp.dot(wa_mf, mf, preferred_element_type=f32)
              + b[_RA:_RA + 1, :])                                         # (1, Bt)
    out_ref[...] = jax.nn.sigmoid(logits)                                  # lane-dense store


# ---- wrapper ----------------------------------------------------------------------
def pack_inputs(user_vec, item_vec):
    """Producer-side layout op: emits the lane-dense (2*D, B) bf16 slab the kernel
    consumes. In a real model this is fused into the embedding gather (emit bf16
    feature-major directly); it is NOT part of the kernel's HBM traffic."""
    return jnp.concatenate([user_vec, item_vec], axis=-1).T.astype(jnp.bfloat16)


def _pick_block_b(batch, block_b_max=8192):
    # Big tiles amortize the ~0.35 us/step pipeline overhead; cap so that (a) the
    # grid keeps >= 2 blocks so the "parallel" axis can split across v7x's two
    # TensorCores, and (b) the double-buffered bf16 input blocks + f32 intermediates
    # stay comfortably inside the 32 MiB scoped-VMEM budget requested below
    # (v7x: 64 MiB physical; v5e/v6e: 128 MiB). Sweep block_b_max up to 32768 on
    # hardware if profiling shows the pipeline is still overhead-bound.
    half = -(-batch // 2)
    half = -(-half // 128) * 128
    return int(max(128, min(block_b_max, half)))


def neucf_forward(x_packed, wslab, bslab, *, block_b=None):
    """NeuCF forward.

    x_packed: (2*EMB_DIM, B) bf16, feature-major (rows 0:32 user, 32:64 item,
              batch on the lane axis). Produced upstream (see pack_inputs); this
              wrapper performs no casts / pads / transposes.
    wslab:    (64, 64) f32 packed weight slab (see build_params).
    bslab:    (64, 1)  f32 packed bias slab.
    Returns (B, 1) f32 ratings.
    """
    feat, batch = x_packed.shape
    assert feat == IN_DIM, f"expected {IN_DIM} feature rows, got {feat}"
    assert x_packed.dtype == jnp.bfloat16, "producer must emit bf16 (see pack_inputs)"
    assert wslab.shape == (64, 64) and bslab.shape == (64, 1)

    if block_b is None:
        block_b = _pick_block_b(batch)
    assert block_b % 128 == 0, "block_b must be a multiple of 128 (lane-dense blocks)"
    num_blocks = pl.cdiv(batch, block_b)   # ragged tail -> Pallas boundary block

    in_specs = [
        pl.BlockSpec((IN_DIM, block_b), lambda i: (0, i)),   # batch stream, lane-dense
        pl.BlockSpec(wslab.shape, lambda i: (0, 0)),         # fetched once, resident
        pl.BlockSpec(bslab.shape, lambda i: (0, 0)),         # fetched once, resident
    ]
    out_specs = pl.BlockSpec((1, block_b), lambda i: (0, i))  # lane-dense logits

    flops_per_col = 2 * (LAYERS[0] * LAYERS[1] + LAYERS[1] * LAYERS[2]
                         + LAYERS[2] * LAYERS[3] + (LAYERS[1] + LAYERS[3]))
    cost = pl.CostEstimate(
        flops=int(flops_per_col * batch),
        transcendentals=int(batch),                                  # sigmoid
        bytes_accessed=int(batch * (IN_DIM * 2 + 4)
                           + wslab.size * 4 + bslab.size * 4),
    )

    out = pl.pallas_call(
        neucf_kernel,
        out_shape=jax.ShapeDtypeStruct((1, batch), jnp.float32),
        grid=(num_blocks,),
        in_specs=in_specs,
        out_specs=out_specs,
        compiler_params=pltpu.CompilerParams(
            dimension_semantics=("parallel",),        # megacore split on v7x
            vmem_limit_bytes=32 * 1024 * 1024,        # explicit; safe on v5e/v6e/v7x
        ),
        cost_estimate=cost,
    )(x_packed, wslab, bslab)

    # (1, B) -> (B, 1) is a pure metadata reshape (same row-major order).
    return out.reshape(batch, 1)


# ---- deterministic parameter construction (mirrors init_weight) --------------------
def xavier_uniform(key, out_features, in_features):
    limit = math.sqrt(6.0 / (in_features + out_features))
    # torch convention: weight shape (out, in)
    return jax.random.uniform(key, (out_features, in_features), jnp.float32,
                              -limit, limit)


def build_params(key):
    kw, kb = jax.random.split(key)
    k0, k1, k2, ka = jax.random.split(kw, 4)
    W0 = xavier_uniform(k0, LAYERS[1], LAYERS[0])          # (32, 64)
    W1 = xavier_uniform(k1, LAYERS[2], LAYERS[1])          # (16, 32)
    W2 = xavier_uniform(k2, LAYERS[3], LAYERS[2])          # (8, 16)
    Wa = xavier_uniform(ka, 1, LAYERS[1] + LAYERS[-1])     # (1, 40)
    # torch's init_weight() zeroes the biases; small non-zero values are used here so
    # the test exercises the kernel's bias path (forward() is value-agnostic).
    kb0, kb1, kb2, kba = jax.random.split(kb, 4)
    b0 = 0.01 * jax.random.normal(kb0, (LAYERS[1],), jnp.float32)
    b1 = 0.01 * jax.random.normal(kb1, (LAYERS[2],), jnp.float32)
    b2 = 0.01 * jax.random.normal(kb2, (LAYERS[3],), jnp.float32)
    ba = 0.01 * jax.random.normal(kba, (1,), jnp.float32)

    torch_params = dict(W0=W0, b0=b0, W1=W1, b1=b1, W2=W2, b2=b2, Wa=Wa, ba=ba)

    # Pack everything into two resident slabs (one DMA each, no per-step re-fetch).
    wslab = jnp.zeros((64, 64), jnp.float32)
    wslab = wslab.at[_R0:_R1, :].set(W0)
    wslab = wslab.at[_R1:_R2, 0:LAYERS[1]].set(W1)
    wslab = wslab.at[_R2:_RA, 0:LAYERS[2]].set(W2)
    wslab = wslab.at[_RA:_RA + 1, 0:LAYERS[1] + LAYERS[3]].set(Wa)

    bslab = jnp.zeros((64, 1), jnp.float32)
    bslab = bslab.at[_R0:_R1, 0].set(b0)
    bslab = bslab.at[_R1:_R2, 0].set(b1)
    bslab = bslab.at[_R2:_RA, 0].set(b2)
    bslab = bslab.at[_RA, 0].set(ba[0])
    return wslab, bslab, torch_params


# ---- pure-JAX reference (direct transcription of the PyTorch forward) ---------------
def ref_forward(u, it, p):
    x = jnp.concatenate([u, it], axis=-1)
    mf = u * it
    x = jnp.maximum(x @ p["W0"].T + p["b0"], 0.0)
    x = jnp.maximum(x @ p["W1"].T + p["b1"], 0.0)
    x = jnp.maximum(x @ p["W2"].T + p["b2"], 0.0)
    vec = jnp.concatenate([x, mf], axis=-1)
    logits = vec @ p["Wa"].T + p["ba"]
    return jax.nn.sigmoid(logits)


if __name__ == "__main__":
    key = jax.random.PRNGKey(0)
    kp, ku, ki = jax.random.split(key, 3)

    wslab, bslab, torch_params = build_params(kp)

    # Small batch, deliberately NOT a multiple of the tile -> exercises the
    # multi-block grid and the padding-free ragged-tail path (auto block_b = 256
    # here -> 2 grid blocks).
    B = 300
    # Inputs play the role of already-embedded user/item vectors (std=0.01,
    # matching the module's embedding init scale).
    user_vec = 0.01 * jax.random.normal(ku, (B, EMB_DIM), jnp.float32)
    item_vec = 0.01 * jax.random.normal(ki, (B, EMB_DIM), jnp.float32)

    # Producer-side packing into the lane-dense bf16 layout the kernel consumes.
    x_packed = pack_inputs(user_vec, item_vec)

    out = neucf_forward(x_packed, wslab, bslab)
    out = jax.block_until_ready(out)
    assert out.shape == (B, 1)
    assert bool(jnp.all(jnp.isfinite(out)))

    # Reference = f32 transcription of the PyTorch forward, evaluated on the
    # bf16-rounded inputs the kernel actually consumes (kernel additionally rounds
    # weights/activations to bf16 for the MXU -> small tolerance).
    u_q = user_vec.astype(jnp.bfloat16).astype(jnp.float32)
    i_q = item_vec.astype(jnp.bfloat16).astype(jnp.float32)
    ref = ref_forward(u_q, i_q, torch_params)
    err = float(jnp.max(jnp.abs(out - ref)))
    assert err < 2e-3, f"max abs err {err}"

    print("KERNEL_OK")
</pallas_src>

<mosaic_0001>
module attributes {stable_mosaic.version = 11 : i64} {
  func.func @neucf_kernel(%arg0: i32, %arg1: memref<64x256xbf16, #tpu.memory_space<vmem>>, %arg2: memref<64x64xf32, #tpu.memory_space<vmem>>, %arg3: memref<64x1xf32, #tpu.memory_space<vmem>>, %arg4: memref<1x256xf32, #tpu.memory_space<vmem>>) attributes {dimension_semantics = [#tpu.dimension_semantics<parallel>], iteration_bounds = array<i64: 2>, scalar_prefetch = 0 : i64, scratch_operands = 0 : i64, tpu.core_type = #tpu.core_type<tc>, window_params = [{transform_indices = @transform_0, window_bounds = array<i64: 64, 256>}, {pipeline_mode = #tpu.pipeline_mode<synchronous>, transform_indices = @transform_1, window_bounds = array<i64: 64, 64>}, {pipeline_mode = #tpu.pipeline_mode<synchronous>, transform_indices = @transform_2, window_bounds = array<i64: 64, 1>}, {transform_indices = @transform_3, window_bounds = array<i64: 1, 256>}]} {
    %c0 = arith.constant 0 : index
    %c0_0 = arith.constant 0 : index
    %0 = vector.load %arg1[%c0, %c0_0] : memref<64x256xbf16, #tpu.memory_space<vmem>>, vector<64x256xbf16>
    %c0_1 = arith.constant 0 : index
    %c0_2 = arith.constant 0 : index
    %1 = vector.load %arg2[%c0_1, %c0_2] : memref<64x64xf32, #tpu.memory_space<vmem>>, vector<64x64xf32>
    %c0_3 = arith.constant 0 : index
    %c0_4 = arith.constant 0 : index
    %2 = vector.load %arg3[%c0_3, %c0_4] : memref<64x1xf32, #tpu.memory_space<vmem>>, vector<64x1xf32>
    %3 = vector.extract_strided_slice %0 {offsets = [0, 0], sizes = [32, 256], strides = [1, 1]} : vector<64x256xbf16> to vector<32x256xbf16>
    %4 = vector.extract_strided_slice %0 {offsets = [32, 0], sizes = [32, 256], strides = [1, 1]} : vector<64x256xbf16> to vector<32x256xbf16>
    %5 = arith.mulf %3, %4 : vector<32x256xbf16>
    %6 = vector.extract_strided_slice %1 {offsets = [0, 0], sizes = [32, 64], strides = [1, 1]} : vector<64x64xf32> to vector<32x64xf32>
    %7 = arith.truncf %6 : vector<32x64xf32> to vector<32x64xbf16>
    %cst = arith.constant dense<0.000000e+00> : vector<32x256xf32>
    %8 = tpu.matmul %7, %0, %cst {dimension_numbers = #tpu.dot_dimension_numbers<[1], [0], [0], [1], [0, 0, 1, 1], [], []>} : vector<32x64xbf16>, vector<64x256xbf16>, vector<32x256xf32> -> vector<32x256xf32>
    %9 = vector.extract_strided_slice %2 {offsets = [0, 0], sizes = [32, 1], strides = [1, 1]} : vector<64x1xf32> to vector<32x1xf32>
    %10 = vector.broadcast %9 : vector<32x1xf32> to vector<32x256xf32>
    %11 = arith.addf %8, %10 : vector<32x256xf32>
    %cst_5 = arith.constant 0.000000e+00 : f32
    %12 = vector.broadcast %cst_5 : f32 to vector<32x256xf32>
    %13 = arith.maximumf %11, %12 : vector<32x256xf32>
    %14 = arith.truncf %13 : vector<32x256xf32> to vector<32x256xbf16>
    %15 = vector.extract_strided_slice %1 {offsets = [32, 0], sizes = [16, 32], strides = [1, 1]} : vector<64x64xf32> to vector<16x32xf32>
    %16 = arith.truncf %15 : vector<16x32xf32> to vector<16x32xbf16>
    %cst_6 = arith.constant dense<0.000000e+00> : vector<16x256xf32>
    %17 = tpu.matmul %16, %14, %cst_6 {dimension_numbers = #tpu.dot_dimension_numbers<[1], [0], [0], [1], [0, 0, 1, 1], [], []>} : vector<16x32xbf16>, vector<32x256xbf16>, vector<16x256xf32> -> vector<16x256xf32>
    %18 = vector.extract_strided_slice %2 {offsets = [32, 0], sizes = [16, 1], strides = [1, 1]} : vector<64x1xf32> to vector<16x1xf32>
    %19 = vector.broadcast %18 : vector<16x1xf32> to vector<16x256xf32>
    %20 = arith.addf %17, %19 : vector<16x256xf32>
    %cst_7 = arith.constant 0.000000e+00 : f32
    %21 = vector.broadcast %cst_7 : f32 to vector<16x256xf32>
    %22 = arith.maximumf %20, %21 : vector<16x256xf32>
    %23 = arith.truncf %22 : vector<16x256xf32> to vector<16x256xbf16>
    %24 = vector.extract_strided_slice %1 {offsets = [48, 0], sizes = [8, 16], strides = [1, 1]} : vector<64x64xf32> to vector<8x16xf32>
    %25 = arith.truncf %24 : vector<8x16xf32> to vector<8x16xbf16>
    %cst_8 = arith.constant dense<0.000000e+00> : vector<8x256xf32>
    %26 = tpu.matmul %25, %23, %cst_8 {dimension_numbers = #tpu.dot_dimension_numbers<[1], [0], [0], [1], [0, 0, 1, 1], [], []>} : vector<8x16xbf16>, vector<16x256xbf16>, vector<8x256xf32> -> vector<8x256xf32>
    %27 = vector.extract_strided_slice %2 {offsets = [48, 0], sizes = [8, 1], strides = [1, 1]} : vector<64x1xf32> to vector<8x1xf32>
    %28 = vector.broadcast %27 : vector<8x1xf32> to vector<8x256xf32>
    %29 = arith.addf %26, %28 : vector<8x256xf32>
    %cst_9 = arith.constant 0.000000e+00 : f32
    %30 = vector.broadcast %cst_9 : f32 to vector<8x256xf32>
    %31 = arith.maximumf %29, %30 : vector<8x256xf32>
    %32 = arith.truncf %31 : vector<8x256xf32> to vector<8x256xbf16>
    %33 = vector.extract_strided_slice %1 {offsets = [56, 0], sizes = [1, 8], strides = [1, 1]} : vector<64x64xf32> to vector<1x8xf32>
    %34 = arith.truncf %33 : vector<1x8xf32> to vector<1x8xbf16>
    %35 = vector.extract_strided_slice %1 {offsets = [56, 8], sizes = [1, 32], strides = [1, 1]} : vector<64x64xf32> to vector<1x32xf32>
    %36 = arith.truncf %35 : vector<1x32xf32> to vector<1x32xbf16>
    %cst_10 = arith.constant dense<0.000000e+00> : vector<1x256xf32>
    %37 = tpu.matmul %34, %32, %cst_10 {dimension_numbers = #tpu.dot_dimension_numbers<[1], [0], [0], [1], [0, 0, 1, 1], [], []>} : vector<1x8xbf16>, vector<8x256xbf16>, vector<1x256xf32> -> vector<1x256xf32>
    %cst_11 = arith.constant dense<0.000000e+00> : vector<1x256xf32>
    %38 = tpu.matmul %36, %5, %cst_11 {dimension_numbers = #tpu.dot_dimension_numbers<[1], [0], [0], [1], [0, 0, 1, 1], [], []>} : vector<1x32xbf16>, vector<32x256xbf16>, vector<1x256xf32> -> vector<1x256xf32>
    %39 = arith.addf %37, %38 : vector<1x256xf32>
    %40 = vector.extract_strided_slice %2 {offsets = [56, 0], sizes = [1, 1], strides = [1, 1]} : vector<64x1xf32> to vector<1x1xf32>
    %41 = vector.broadcast %40 : vector<1x1xf32> to vector<1x256xf32>
    %42 = arith.addf %39, %41 : vector<1x256xf32>
    %43 = arith.negf %42 : vector<1x256xf32>
    %44 = math.exp %43 : vector<1x256xf32>
    %cst_12 = arith.constant 1.000000e+00 : f32
    %45 = vector.broadcast %cst_12 : f32 to vector<1x256xf32>
    %46 = arith.addf %45, %44 : vector<1x256xf32>
    %47 = arith.divf %45, %46 : vector<1x256xf32>
    %c0_13 = arith.constant 0 : index
    %c0_14 = arith.constant 0 : index
    %48 = vector.load %arg4[%c0_13, %c0_14] : memref<1x256xf32, #tpu.memory_space<vmem>>, vector<1x256xf32>
    tpu.vector_store %arg4[%c0_13, %c0_14], %47 {strides = array<i32>} : memref<1x256xf32, #tpu.memory_space<vmem>>, vector<1x256xf32>,
    return
  }
  func.func @transform_0(%arg0: i32) -> (i32, i32) {
    %c0_i32 = arith.constant 0 : i32
    %c0_i32_0 = arith.constant 0 : i32
    return %c0_i32, %arg0 : i32, i32
  }
  func.func @transform_1(%arg0: i32) -> (i32, i32) {
    %c0_i32 = arith.constant 0 : i32
    %c0_i32_0 = arith.constant 0 : i32
    %c0_i32_1 = arith.constant 0 : i32
    return %c0_i32, %c0_i32_0 : i32, i32
  }
  func.func @transform_2(%arg0: i32) -> (i32, i32) {
    %c0_i32 = arith.constant 0 : i32
    %c0_i32_0 = arith.constant 0 : i32
    %c0_i32_1 = arith.constant 0 : i32
    return %c0_i32, %c0_i32_0 : i32, i32
  }
  func.func @transform_3(%arg0: i32) -> (i32, i32) {
    %c0_i32 = arith.constant 0 : i32
    %c0_i32_0 = arith.constant 0 : i32
    return %c0_i32, %arg0 : i32, i32
  }
}

</mosaic_0001>

<bundles_post_ra>
// kernel: tpu_custom_call.1
= control target key start
LH: loop header
LB: loop body
LE: loop exit
PB: predicated region body
PF: predicated region fallthrough
CT: control target
= control target key end

     0   :  { %8 = vsyncpa [#allocation3], 0  ;;  %s1231_s0 = inlined_call_operand.hbm [shape: bf16[64,300], index: 0, kind: input, shape index: {}]   ;;  %s1232_s1 = inlined_call_operand.vmem [shape: f32[64,64], index: 1, kind: input, shape index: {}]   ;;  %s1233_s2 = inlined_call_operand.vmem [shape: f32[64,1], index: 2, kind: input, shape index: {}]   ;;  %s1234_s3 = inlined_call_operand.hbm [shape: f32[1,300], index: 3, kind: output, shape index: {}]  }
   0x1   :  { %10 = vsyncpa [#allocation3 + $0x1], 0 }
   0x2   :  { %11 = vsyncpa [#allocation4], 0 }
   0x3   :  { %13 = vsyncpa [#allocation4 + $0x1], 0  ;;  %s971_s12 = smov 0   ;;  %s973_s13 = smov 0  }
   0x4   :  { %s975_s14 = smov 0   ;;  %s977_s15 = smov 0  }
   0x5 LB: > { %s992_s16 = sadd.s32 4294967295, %s942_s15   ;;  %s740_s17 = sadd.s32 4294967294, %s942_s15   ;;  %s942_s15 = sphi %s977_s15, %s1244_s15   ;;  %s938_s14 = sphi %s975_s14, %s1243_s14   ;;  %s934_s13 = sphi %s973_s13, %s1242_s13   ;;  %s930_s12 = sphi %s971_s12, %s1241_s12  }
   0x6   : > { %s996_s18 = sadd.s32 1, %s942_s15   ;;  %s26_s19 = sadd.s32 1, %s938_s14 }
   0x7   : > { %s23_s20 = ssub.s32 %s942_s15, %s996_s18  ;;  %p33_p0 = scmp.ne.s32.totalorder %s938_s14, %s934_s13 }
   0x8   : > { %p24_p1 = scmp.eq.s32.totalorder %s23_s20, 0  ;;  %p34_p2 = scmp.eq.s32.totalorder %s942_s15, 0 }
   0x9   : > { %p39_p3 = scmp.ne.s32.totalorder %s934_s13, %s930_s12  ;;  %p40_p4 = scmp.eq.s32.totalorder %s992_s16, 0 }
   0xa   : > { %s1008_s21 = scalar_select %p24_p1, %s938_s14, %s26_s19  }
   0xb   : > { %p35_p5 = por %p34_p2, %p33_p0  ;;  %p1010_p6 = por %p40_p4, %p39_p3 }
   0xc   : > { %p105_p7 = scmp.eq.s32.totalorder %s992_s16, 1  ;;  %p111_p8 = scmp.eq.s32.totalorder %s740_s17, 1 }
   0xd   : > { %p1235_p11 = scmp.ge.s32.totalorder %s942_s15, 2 }
   0xe   : > { %p1015_p9 = por %p105_p7, %p33_p0  ;;  %p1019_p10 = por %p111_p8, %p39_p3 }
   0xf   : > { %133 = sbr.rel (%p1235_p11) target bundleno = 57 (0x39), region = 24 }
  0x10   : > { %s1238_s24 = scalar_select %p1019_p10, 1, 0 }
  0x16   : > { %136 = sbr.rel (!%p35_p5) target bundleno = 57 (0x39), region = 28  ;;  %s137_s25 = sand.u32 (%p35_p5), 1, %s938_s14  }
  0x17   : > { %s744_s26 = sshll.u32 (%p35_p5), %s942_s15, 1  ;;  %s743_s27 = sshll.u32 (%p35_p5), %s137_s25, 6 }
  0x18   : > { %s143_s28 = ssub.s32 (%p35_p5), 3, %s744_s26  ;;  %s1034_s4 = scalar_lea.sflag (%p35_p5), [#allocation3], %s137_s25 }
  0x19   : > { %p144_p12 = scmp.lt.s32.totalorder (%p35_p5), %s143_s28, 2  ;;  %s141_s5 = scalar_lea.vmem (%p35_p5), [#allocation2], %s743_s27 }
  0x1d   : > { %s1246_s28 = smov (!%p144_p12, %s143_s28), 2 }
  0x1e   : > { %s1031_s29 = sshll.u32 %s1246_s28, 9 }
  0x1f   : > { %s148_s30 = ssub.s32 1024, %s1031_s29 }
  0x20   : > { %149 = vsyncadd %s1034_s4, %s148_s30  ;;  %p746_p13 = scmp.ne.s32.totalorder %s1031_s29, 0  ;;  %s782_s6 = sshll.u32 %s942_s15, 7 }
  0x21   : > { %s1042_s9 = scalar_lea.hbm %s1231_s0, %s782_s6  ;;  %s748_s10 = sshll.u32 %s1246_s28, 2 }
  0x22   : > { %s155_s11 = sshll.u32 %s141_s5, 4  ;;  %s848_s17 = scalar_lea.hbm %s1042_s9, %s1031_s29  ;;  %s1045_s11 = int_to_ptr.vmem [resolvable:$true] %s155_s11 }
  0x23   : > { %p849_p0 = scmp.ne.s32.totalorder %s1042_s9, %s848_s17  ;;  %s852_s25 = scalar_lea.hbm %s1231_s0, 1536 }
  0x24   : > { %p853_p3 = scmp.lt.u32.totalorder %s1042_s9, %s1231_s0  ;;  %p854_p4 = scmp.lt.u32.totalorder %s852_s25, %s848_s17 }
  0x25   : > { %p850_p1 = pnand %p849_p0, %p746_p13  ;;  %p856_p7 = scmp.lt.u32.totalorder %s848_s17, %s1042_s9 }
  0x26   : > { %p855_p5 = por %p854_p4, %p853_p3 }
  0x27   : > { %p851_p2 = pneg %p850_p1 }
  0x28   : > { %p857_p8 = por %p856_p7, %p855_p5 }
  0x2a   : > { %p858_p12 = pnand %p857_p8, %p851_p2 }
  0x2c   : > { %861 = shalt.err (!%p858_p12)
}
  0x2d   : > { %s862_s30 = scalar_lea.vmem %s1045_s11, %s1031_s29  ;;  %s944_s5 = smov [#allocation2]  }
  0x2e   : > { %p863_p0 = scmp.ne.s32.totalorder %s1045_s11, %s862_s30  ;;  %s866_s6 = sshll.u32 %s944_s5, 4  ;;  %s867_s6 = int_to_ptr.vmem [resolvable:$false] %s866_s6 }
  0x2f   : > { %s868_s7 = scalar_lea.vmem %s867_s6, 2048  ;;  %p869_p10 = scmp.lt.s32.totalorder %s1045_s11, %s867_s6 }
  0x30   : > { %p864_p1 = pnand %p863_p0, %p746_p13  ;;  %p870_p3 = scmp.lt.s32.totalorder %s868_s7, %s862_s30 }
  0x32   : > { %p865_p11 = pneg %p864_p1  ;;  %p871_p4 = por %p870_p3, %p869_p10 }
  0x34   : > { %p872_p5 = pnand %p871_p4, %p865_p11 }
  0x36   : > { %875 = shalt.err (!%p872_p5)
}
  0x37   : > { %s945_s8 = smov 192   ;;  %s946_s17 = smov 128  }
  0x38   : > { %161 = dma.hbm_to_vmem [thread:$0]  (%p746_p13), %s1042_s9, %s1031_s29, %s1045_s11, %s1034_s4, %s945_s8, %s946_s17, %s748_s10  }
  0x39 PF: > { %p751_p2 = scmp.ge.s32.totalorder %s942_s15, 1  ;;  %p163_p7 = scmp.lt.s32.totalorder %s942_s15, 3 }
  0x3b   : > { %p164_p10 = pnand %p751_p2, %p163_p7 }
  0x3c   : > { %s1077_s19 = sand.u32 (!%p164_p10), 1, %s934_s13  }
  0x3d   : > { %167 = sbr.rel (%p164_p10) target bundleno = 1046 (0x416), region = 32  ;;  %s752_s20 = sshll.u32 (!%p164_p10), %s1077_s19, 6 }
  0x3e   : > { %s170_s25 = scalar_lea.sflag (!%p164_p10), [#allocation3], %s1077_s19  ;;  %s173_s26 = scalar_lea.vmem (!%p164_p10), [#allocation2], %s752_s20 }
  0x44   : > { %921 = dma.done.wait (%p1010_p6), %s170_s25, 1024  }
  0x45   : > { %923 = vsyncadd (%p1010_p6), %s170_s25, 4294966272  ;;  %v947_v0 = vmov 0   ;;  %v207_v1 = vld [vmem:[%s173_s26] sm:$0xff]  ;;  %v208_v2 = vld [vmem:[%s173_s26 + $0x8] sm:$0xff]  ;;  %vm297_vm0 = vcmask 523264   ;;  %vm380_vm1 = vcmask 261120  }
  0x46   : > { %336 = vmatprep.mubr.bf16.mxu0 %v947_v0  ;;  %830 = vset.pattern.permute.xlu0 %v947_v0  ;;  %v211_v3 = vld [vmem:[%s173_s26 + $0x20] sm:$0xff]  ;;  %v212_v4 = vld [vmem:[%s173_s26 + $0x28] sm:$0xff]  ;;  %v755_v6 = vcombine.high %v207_v1, %v208_v2  ;;  %v754_v7 = vcombine.low %v207_v1, %v208_v2  ;;  %v1091_v8 = vld [vmem:[%s173_s26 + $0x10] sm:$0xff]  ;;  %s948_s17 = smov 120   ;;  %vm439_vm2 = vcmask 130048   ;;  %vm560_vm3 = vcmask 1043456  }
  0x47   : > { %831 = vset.pattern.permute.xlu1 %v947_v0  ;;  %416 = vmatprep.mubr.bf16.mxu1 %v947_v0  ;;  %v1089_v5 = vmul.bf16 %v211_v3, %v207_v1  ;;  %v1093_v9 = vld [vmem:[%s173_s26 + $0x18] sm:$0xff]  ;;  %v1095_v10 = vmul.bf16 %v212_v4, %v208_v2  ;;  %v223_v14 = vld [vmem:[%s1233_s2] sm:$0xff]  ;;  %v759_v15 = vcombine.high %v211_v3, %v212_v4  ;;  %v225_v16 = vld [vmem:[%s1233_s2 + $0x10] sm:$0xff]  ;;  %vm556_vm4 = vcmask 64512   ;;  %s651_s28 = scalar_lea.sflag [#allocation4], %s1077_s19  ;;  %s776_s29 = sshll.u32 (%p1015_p9), %s992_s16, 1 }
  0x48   : > { %v757_v11 = vcombine.high %v1091_v8, %v1093_v9  ;;  %304 = vmatprep.subr.bf16.mxu0 %v755_v6  ;;  %v756_v13 = vcombine.low %v1091_v8, %v1093_v9  ;;  %239 = vperm.xlu0 %830, %v223_v14   ;;  %v1109_v17 = vld [vmem:[%s173_s26 + $0x30] sm:$0xff]  ;;  %v1111_v18 = vld [vmem:[%s173_s26 + $0x38] sm:$0xff]  ;;  %v224_v19 = vld [vmem:[%s1233_s2 + $0x8] sm:$0xff]  ;;  %v758_v21 = vcombine.low %v211_v3, %v212_v4  ;;  %s753_s26 = sshll.u32 %s1077_s19, 1  ;;  %s659_s4 = ssub.s32 (%p1015_p9), 3, %s776_s29 }
  0x49   : > { %v766_v12 = vcombine.low %v1089_v5, %v1095_v10  ;;  %305 = vmatpush1.bf16.msra.mxu0 %v754_v7  ;;  %249 = vperm.xlu1 %831, %v225_v16   ;;  %v226_v20 = vld [vmem:[%s1233_s2 + $0x18] sm:$0xff]  ;;  %v761_v22 = vcombine.high %v1109_v17, %v1111_v18  ;;  %v227_v23 = vld [vmem:[%s1233_s2 + $0x20] sm:$0xff]  ;;  %v228_v24 = vld [vmem:[%s1233_s2 + $0x28] sm:$0xff]  ;;  %v760_v25 = vcombine.low %v1109_v17, %v1111_v18  ;;  %s195_s22 = scalar_lea.vmem [#allocation5], %s753_s26  ;;  %p660_p6 = scmp.lt.s32.totalorder (%p1015_p9), %s659_s4, 2 }
  0x4a   : > { %306 = vmatprep.subr.bf16.mxu0 %v757_v11  ;;  %v215_v26 = vld [vmem:[%s1232_s1] sm:$0xff]  ;;  %v216_v27 = vld [vmem:[%s1232_s1 + $0x8] sm:$0xff]  ;;  %v229_v28 = vld [vmem:[%s1233_s2 + $0x30] sm:$0xff] }
  0x4b   : > { %v235_v29 = vpack.c.bf16 %v216_v27, %v215_v26  ;;  %v230_v30 = vld [vmem:[%s1233_s2 + $0x38] sm:$0xff]  ;;  %v217_v31 = vld [vmem:[%s1232_s1 + $0x10] sm:$0xff]  ;;  %v219_v2 = vld [vmem:[%s1232_s1 + $0x20] sm:$0xff] }
  0x4c   : > { %244 = vperm.xlu0 %830, %v224_v19   ;;  %v218_v32 = vld [vmem:[%s1232_s1 + $0x18] sm:$0xff]  ;;  %v220_v3 = vld [vmem:[%s1232_s1 + $0x28] sm:$0xff] }
  0x4d   : > { %307 = vmatpush1.bf16.msra.mxu0 %v756_v13  ;;  %254 = vperm.xlu1 %831, %v226_v20   ;;  %v236_v33 = vpack.c.bf16 %v218_v32, %v217_v31  ;;  %v369_v6 = vpack.c.bf16 %v220_v3, %v219_v2  ;;  %v222_v7 = vld [vmem:[%s1232_s1 + $0x38] sm:$0xff] }
  0x4e   : > { %308 = vmatprep.subr.bf16.mxu0 %v759_v15  ;;  %v488_v11 = vpack.c.bf16 %v222_v7, %v222_v7 }
  0x50   : > { %372 = vperm.xlu0 %830, %v227_v23  }
  0x51   : > { %309 = vmatpush1.bf16.msra.mxu0 %v758_v21  ;;  %377 = vperm.xlu1 %831, %v228_v24  }
  0x52   : > { %310 = vmatprep.subr.bf16.mxu0 %v761_v22 }
  0x54   : > { %436 = vperm.xlu0 %830, %v229_v28  }
  0x55   : > { %311 = vmatpush1.bf16.msra.mxu0 %v760_v25  ;;  %490 = vrot.lane.b32.xlu1 %v488_v11, %s948_s17 }
  0x58   : > { %762 = vmatmul.mubr.msk.bf16.vlgmr.msra.gmra.mrb[0].mxu0 %vm297_vm0, %v235_v29  ;;  %610 = vperm.xlu0 %830, %v230_v30   ;;  %v221_v30 = vld [vmem:[%s1232_s1 + $0x30] sm:$0xff] }
  0x59   : > { %346 = vmatprep.mubr.bf16.mxu0 %v947_v0  ;;  %v433_v32 = vpack.c.bf16 %v221_v30, %v221_v30 }
  0x60   : > { %763 = vmatmul.mubr.msk.bf16.gmra.mrb[4].mxu0 %vm297_vm0, %v236_v33  ;;  %v767_v33 = vcombine.high %v1089_v5, %v1095_v10 }
  0x61   : > { %599 = vmatprep.mubr.bf16.mxu0 %v947_v0 }
  0xc7   : > { %v240_v34 = vpop.permute.xlu0 %239 }
  0xc8   : > { %v250_v43 = vpop.permute.xlu1 %249 }
  0xcb   : > { %v245_v38 = vpop.permute.xlu0 %244 }
  0xcc   : > { %v255_v54 = vpop.permute.xlu1 %254 }
  0xcf   : > { %v373_v13 = vpop.permute.xlu0 %372 }
  0xd0   : > { %v378_v19 = vpop.permute.xlu1 %377 }
 0x12b   : > { %v338_v35 = vpop.f32.mrb[0].mxu0 }
 0x12c   : > { %v339_v36 = vadd.f32 %v338_v35, %v240_v34  ;;  %v340_v37 = vpop.f32.mrb[1].mxu0  ;;  %v234_v35 = vmul.bf16 %v1111_v18, %v1093_v9 }
 0x12d   : > { %v341_v39 = vadd.f32 %v340_v37, %v240_v34  ;;  %v342_v40 = vpop.f32.mrb[2].mxu0  ;;  %v233_v34 = vmul.bf16 %v1109_v17, %v1091_v8 }
 0x12e   : > { %v343_v41 = vadd.f32 %v342_v40, %v245_v38  ;;  %v344_v42 = vpop.f32.mrb[3].mxu0  ;;  %v357_v45 = vmax.f32 %v339_v36, 0.0 }
 0x12f   : > { %v345_v44 = vadd.f32 %v344_v42, %v245_v38  ;;  %v358_v47 = vmax.f32 %v341_v39, 0.0  ;;  %v769_v36 = vcombine.high %v233_v34, %v234_v35  ;;  %v768_v37 = vcombine.low %v233_v34, %v234_v35  ;;  %v491_v38 = vpop.permute.xlu1 %490 }
 0x130   : > { %v359_v46 = vmax.f32 %v343_v41, 0.0 }
 0x131   : > { %v360_v48 = vmax.f32 %v345_v44, 0.0 }
 0x132   : > { %v365_v49 = vpack.c.bf16 %v359_v46, %v357_v45 }
 0x133   : > { %v348_v50 = vpop.f32.mrb[4].mxu0  ;;  %v366_v51 = vpack.c.bf16 %v360_v48, %v358_v47 }
 0x134   : > { %v349_v52 = vadd.f32 %v348_v50, %v250_v43  ;;  %v350_v53 = vpop.f32.mrb[5].mxu0 }
 0x135   : > { %v351_v55 = vadd.f32 %v350_v53, %v250_v43  ;;  %v352_v56 = vpop.f32.mrb[6].mxu0  ;;  %384 = vmatprep.subr.bf16.mxu1 %v366_v51 }
 0x136   : > { %v353_v57 = vadd.f32 %v352_v56, %v255_v54  ;;  %v354_v58 = vpop.f32.mrb[7].mxu0  ;;  %385 = vmatpush1.bf16.msra.mxu1 %v365_v49  ;;  %v361_v60 = vmax.f32 %v349_v52, 0.0 }
 0x137   : > { %v355_v59 = vadd.f32 %v354_v58, %v255_v54  ;;  %v362_v62 = vmax.f32 %v351_v55, 0.0 }
 0x138   : > { %v363_v61 = vmax.f32 %v353_v57, 0.0 }
 0x139   : > { %v364_v63 = vmax.f32 %v355_v59, 0.0 }
 0x13a   : > { %v367_v1 = vpack.c.bf16 %v363_v61, %v361_v60 }
 0x13b   : > { %v368_v4 = vpack.c.bf16 %v364_v63, %v362_v62  ;;  %v949_v62 = vmov 1966171168  }
 0x13c   : > { %v631_v63 = vunpack.c.l.s4 %v949_v62 }
 0x13d   : > { %386 = vmatprep.subr.bf16.mxu1 %v368_v4 }
 0x13e   : > { %387 = vmatpush1.bf16.msra.mxu1 %v367_v1  ;;  %v633_v1 = vlaneseq  ;;  %v632_v2 = vunpack.c.0.s8 %v631_v63 }
 0x140   : > { %v634_v3 = vshrl.u32 %v633_v1, 7  ;;  %vm647_vm5 = vcmp.lt.s32.totalorder %v633_v1, 256 }
 0x141   : > { %764 = vmatmul.mubr.msk.bf16.vlgmr.msra.gmra.mrb[0].mxu1 %vm380_vm1, %v369_v6 }
 0x142   : > { %475 = vmatprep.mubr.bf16.mxu1 %v947_v0  ;;  %v635_v6 = vsub.s32 %v632_v2, %v634_v3 }
 0x214   : > { %v418_v14 = vpop.f32.mrb[0].mxu1 }
 0x215   : > { %v419_v15 = vadd.f32 %v418_v14, %v373_v13  ;;  %v420_v16 = vpop.f32.mrb[1].mxu1 }
 0x216   : > { %v421_v20 = vadd.f32 %v420_v16, %v373_v13  ;;  %v422_v21 = vpop.f32.mrb[2].mxu1 }
 0x217   : > { %v423_v22 = vadd.f32 %v422_v21, %v378_v19  ;;  %v424_v23 = vpop.f32.mrb[3].mxu1  ;;  %v427_v25 = vmax.f32 %v419_v15, 0.0 }
 0x218   : > { %v425_v24 = vadd.f32 %v424_v23, %v378_v19  ;;  %v428_v27 = vmax.f32 %v421_v20, 0.0 }
 0x219   : > { %v429_v26 = vmax.f32 %v423_v22, 0.0 }
 0x21a   : > { %v430_v28 = vmax.f32 %v425_v24, 0.0 }
 0x21b   : > { %v431_v29 = vpack.c.bf16 %v429_v26, %v427_v25 }
 0x21c   : > { %v432_v31 = vpack.c.bf16 %v430_v28, %v428_v27 }
 0x21e   : > { %443 = vmatprep.subr.bf16.mxu1 %v432_v31 }
 0x21f   : > { %444 = vmatpush1.bf16.msra.mxu1 %v431_v29 }
 0x220   : > { %515 = vmatprep.subr.bf16.mxu1 %v767_v33 }
 0x222   : > { %765 = vmatmul.mubr.msk.bf16.vlgmr.msra.gmra.mrb[4].mxu1 %vm439_vm2, %v433_v32 }
 0x223   : > { %547 = vmatprep.mubr.bf16.mxu1 %v947_v0  ;;  %516 = vmatpush1.bf16.msra.mxu1 %v766_v12  ;;  %v437_v0 = vpop.permute.xlu0 %436 }
 0x224   : > { %517 = vmatprep.subr.bf16.mxu1 %v769_v36 }
 0x227   : > { %518 = vmatpush1.bf16.msra.mxu1 %v768_v37  ;;  %v611_v50 = vpop.permute.xlu0 %610 }
 0x22a   : > { %770 = vmatmul.mubr.msk.bf16.vlgmr.msra.gmra.mrb[8].mxu1 %vm380_vm1, %v491_v38 }
 0x2f5   : > { %v477_v39 = vpop.f32.mrb[4].mxu1 }
 0x2f6   : > { %v478_v40 = vadd.f32 %v477_v39, %v437_v0  ;;  %v479_v41 = vpop.f32.mrb[5].mxu1 }
 0x2f7   : > { %v480_v42 = vadd.f32 %v479_v41, %v437_v0  ;;  %v481_v8 = vpop.f32.mrb[6].mxu1 }
 0x2f8   : > { %v484_v17 = vmax.f32 %v478_v40, 0.0  ;;  %v482_v43 = vpop.f32.mrb[7].mxu1 }
 0x2f9   : > { %v485_v9 = vmax.f32 %v480_v42, 0.0 }
 0x2fa   : > { %v486_v18 = vpack.c.bf16 %v484_v17, %v484_v17 }
 0x2fb   : > { %v487_v5 = vpack.c.bf16 %v485_v9, %v485_v9 }
 0x2fc   : > { %v562_v10 = vsel %vm560_vm3, %v486_v18, 0 }
 0x2fd   : > { %771 = vmatprep.subr.msk.bf16.mxu0 %vm560_vm3, %v487_v5  ;;  %v549_v12 = vpop.f32.mrb[8].mxu1 }
 0x2fe   : > { %568 = vmatpush1.bf16.msra.mxu0 %v562_v10  ;;  %v551_v44 = vpop.f32.mrb[9].mxu1 }
 0x2ff   : > { %v553_v45 = vpop.f32.mrb[10].mxu1 }
 0x300   : > { %v554_v46 = vpop.f32.mrb[11].mxu1 }
 0x301   : > { %772 = vmatmul.mubr.msk.bf16.vlgmr.msra.gmra.mrb[8].mxu0 %vm556_vm4, %v488_v11 }
 0x3d4   : > { %v601_v47 = vpop.f32.mrb[8].mxu0 }
 0x3d5   : > { %v602_v48 = vadd.f32 %v601_v47, %v549_v12  ;;  %v603_v49 = vpop.f32.mrb[9].mxu0 }
 0x3d6   : > { %v604_v51 = vadd.f32 %v603_v49, %v551_v44  ;;  %v605_v52 = vpop.f32.mrb[10].mxu0 }
 0x3d7   : > { %v613_v53 = vadd.f32 %v611_v50, %v602_v48  ;;  %v606_v54 = vpop.f32.mrb[11].mxu0 }
 0x3d8   : > { %v614_v55 = vadd.f32 %v611_v50, %v604_v51 }
 0x3d9   : > { %v773_v56 = vmul.f32 -1.442695, %v613_v53 }
 0x3da   : > { %v774_v57 = vmul.f32 -1.442695, %v614_v55 }
 0x3db   : > { %840 = vpow2.f32 %v773_v56 }
 0x3dc   : > { %842 = vpow2.f32 %v774_v57 }
 0x3e5   : > { %v841_v58 = vpop.eup %840 }
 0x3e6   : > { %v843_v59 = vpop.eup %842  ;;  %v621_v60 = vadd.f32 1.0, %v841_v58 }
 0x3e7   : > { %v622_v61 = vadd.f32 1.0, %v843_v59 }
 0x3e8   : > { %844 = vrcp.f32 %v621_v60 }
 0x3e9   : > { %846 = vrcp.f32 %v622_v61 }
 0x3f2   : > { %v845_v4 = vpop.eup %844 }
 0x3f3   : > { %v847_v7 = vpop.eup %846 }
 0x3f4   : > { %v629_v11 = vcombine.low %v845_v4, %v847_v7  ;;  %657 = sbr.rel (!%p1015_p9) target bundleno = 1046 (0x416), region = 40 }
 0x3f6   : > { %v636_v13 = vrot.slane %v629_v11, %v635_v6 }
 0x3f8   : > { %v643_v14 = vrot.slane %v636_v13, %v635_v6 }
 0x3fa   : > { %649 = vst.msk [vmem:[%s195_s22] sm:$0x3] %vm647_vm5, %v643_v14 }
 0x3fb   : > { %s1248_s4 = smov (!%p660_p6, %s659_s4), 2 }
 0x3fc   : > { %s1179_s9 = sshll.u32 %s1248_s4, 4 }
 0x3fd   : > { %s664_s10 = ssub.s32 32, %s1179_s9 }
 0x3fe   : > { %665 = vsyncadd %s651_s28, %s664_s10  ;;  %p778_p11 = scmp.ne.s32.totalorder %s1179_s9, 0  ;;  %s785_s11 = sshll.u32 %s992_s16, 5 }
 0x3ff   : > { %s1189_s30 = scalar_lea.hbm %s1234_s3, %s785_s11  ;;  %s670_s5 = sshll.u32 %s195_s22, 4  ;;  %s671_s5 = int_to_ptr.vmem [resolvable:$true] %s670_s5 }
 0x400   : > { %s876_s6 = scalar_lea.vmem %s671_s5, %s1179_s9  ;;  %s950_s7 = smov [#allocation5]  }
 0x401   : > { %p877_p9 = scmp.ne.s32.totalorder %s671_s5, %s876_s6  ;;  %s880_s8 = sshll.u32 %s950_s7, 4  ;;  %s881_s8 = int_to_ptr.vmem [resolvable:$false] %s880_s8 }
 0x402   : > { %s882_s17 = scalar_lea.vmem %s881_s8, 64  ;;  %p883_p12 = scmp.lt.s32.totalorder %s671_s5, %s881_s8 }
 0x403   : > { %p878_p13 = pnand %p877_p9, %p778_p11  ;;  %p884_p0 = scmp.lt.s32.totalorder %s882_s17, %s876_s6 }
 0x405   : > { %p879_p8 = pneg %p878_p13  ;;  %p885_p1 = por %p884_p0, %p883_p12 }
 0x407   : > { %p886_p3 = pnand %p885_p1, %p879_p8 }
 0x409   : > { %889 = shalt.err (!%p886_p3)
}
 0x40a   : > { %s890_s16 = scalar_lea.hbm %s1189_s30, %s1179_s9  ;;  %s894_s26 = scalar_lea.hbm %s1234_s3, 48 }
 0x40b   : > { %p891_p4 = scmp.ne.s32.totalorder %s1189_s30, %s890_s16  ;;  %p895_p7 = scmp.lt.u32.totalorder %s1189_s30, %s1234_s3 }
 0x40c   : > { %p896_p10 = scmp.lt.u32.totalorder %s894_s26, %s890_s16  ;;  %p898_p9 = scmp.lt.u32.totalorder %s890_s16, %s1189_s30 }
 0x40d   : > { %p892_p5 = pnand %p891_p4, %p778_p11 }
 0x40e   : > { %p897_p6 = por %p896_p10, %p895_p7 }
 0x40f   : > { %p893_p2 = pneg %p892_p5 }
 0x410   : > { %p899_p13 = por %p898_p9, %p897_p6 }
 0x412   : > { %p900_p8 = pnand %p899_p13, %p893_p2 }
 0x414   : > { %903 = shalt.err (!%p900_p8)
}
 0x415   : > { %673 = dma.vmem_to_hbm [thread:$0]  (%p778_p11), %s671_s5, %s1179_s9, %s1189_s30, %s651_s28  }
 0x416 PF: > { %s682_s4 = sand.u32 1, %s930_s12   ;;  %p1239_p12 = scmp.ne.s32.totalorder %s1238_s24, 0 }
 0x417   : > { %p1240_p0 = scmp.ge.s32.totalorder %s942_s15, 2  ;;  %s683_s10 = scalar_lea.sflag [#allocation4], %s682_s4 }
 0x419   : > { %p789_p1 = pnand %p1240_p0, %p1239_p12 }
 0x41b   : > { %925 = dma.done.wait (!%p789_p1), %s683_s10, 32  }
 0x41c   : > { %927 = vsyncadd (!%p789_p1), %s683_s10, 4294967264  ;;  %p16_p3 = scmp.ge.s32.totalorder %s996_s18, 4   ;;  %s1241_s12 = smov %s934_s13 }
 0x41d   : > { %s1242_s13 = smov %s938_s14  ;;  %s1243_s14 = smov %s1008_s21 }
 0x41e   : > { %s1244_s15 = smov %s996_s18  ;;  %18 = sbr.rel (!%p16_p3) target bundleno = 5 (0x5), region = 77 }
 0x425   :  { %688 = vsyncpa [#allocation3], 1 }
 0x426   :  { %690 = vsyncpa [#allocation3 + $0x1], 1 }
 0x427   :  { %691 = vsyncpa [#allocation4], 1 }
 0x428   :  { %693 = vsyncpa [#allocation4 + $0x1], 1 }

</bundles_post_ra>
